<compile_context>
chip_gen: v6e
topology: v6e:2x2x1
jax: 0.10.0
libtpu: 0.0.40
codegen_flags: <defaults>
</compile_context>

<pallas_src>
import functools

import jax
import jax.numpy as jnp
from jax import lax
from jax.experimental import pallas as pl
from jax.experimental.pallas import tpu as pltpu


def _round_up(x, m):
    return ((x + m - 1) // m) * m


def _pad2(a, rows, cols):
    return jnp.pad(a, ((0, rows - a.shape[0]), (0, cols - a.shape[1])))


def _vmem_budget():
    """Generation-aware scoped-VMEM limit and slab budget (bytes)."""
    cap = None
    try:
        cap = getattr(pltpu.get_tpu_info(), "vmem_capacity_bytes", None)
    except Exception:
        cap = None
    if not cap:
        cap = 64 * 1024 * 1024  # conservative: v7x per-TC physical VMEM
    # v5e/v6e (128 MiB) -> 96 MiB scoped limit; v7x (64 MiB) -> 40 MiB.
    limit = max(32 * 1024 * 1024, min(cap - (24 << 20), 96 * 1024 * 1024))
    budget = limit - (4 << 20)
    return limit, budget


_VMEM_LIMIT, _VMEM_BUDGET = _vmem_budget()


def _compiler_params():
    return pltpu.CompilerParams(
        dimension_semantics=("parallel",),
        vmem_limit_bytes=_VMEM_LIMIT,
    )


def _pick_tq(n_pad, feat_p):
    """Largest row tile whose double-buffered slabs fit the VMEM budget.

    The grid-invariant operands (resident h, a_neigh row) are budgeted at 2x
    because we do not request single-buffering for them.
    # TODO(synk): move grid-invariant operands to pipeline_mode=pl.Buffered(1)
    # once single-buffering is confirmed on the target jax version; until then
    # they are simply accounted for at 2x in this budget.
    """
    resident = 2 * n_pad * feat_p * 2 + 2 * n_pad * 4  # bf16 h (x2 buf) + f32 a_neigh row
    for tq in (512, 256, 128):
        if n_pad % tq != 0:
            continue
        per_step = (
            2 * tq * n_pad * (2 + 4)          # bf16 m_fused in + f32 attention/A_pred out
            + 2 * tq * feat_p * (4 + 2 + 4)   # f32 zn out + bf16 zn out + f32 hp
        )
        if resident + per_step + (2 << 20) <= _VMEM_BUDGET:
            return tq
    return 128


# ----------------------------------------------------------------------------
# Kernel 1: projection  h = x @ W (bf16 out),  attn_pair = h @ [a_self|a_neigh]
# ----------------------------------------------------------------------------
def _proj_kernel(x_ref, w_ref, apair_ref, h_ref, attn_ref):
    # x / W arrive already bf16 from the wrapper; accumulate in f32.
    h = jnp.dot(x_ref[...], w_ref[...], preferred_element_type=jnp.float32)
    # single fused matvec for both attention vectors (f32 for accuracy)
    attn_ref[...] = jnp.dot(h, apair_ref[...], preferred_element_type=jnp.float32)
    h_ref[...] = h.astype(h_ref.dtype)  # bf16 residency for the attention kernel


def gat_project(x_bf, w_bf, a_pair, *, tq):
    n_pad, fin_p = x_bf.shape
    fout_p = w_bf.shape[1]
    grid = (n_pad // tq,)
    return pl.pallas_call(
        _proj_kernel,
        grid=grid,
        in_specs=[
            pl.BlockSpec((tq, fin_p), lambda i: (i, 0)),
            pl.BlockSpec((fin_p, fout_p), lambda i: (0, 0)),
            pl.BlockSpec((fout_p, 2), lambda i: (0, 0)),
        ],
        out_specs=(
            pl.BlockSpec((tq, fout_p), lambda i: (i, 0)),
            pl.BlockSpec((tq, 2), lambda i: (i, 0)),
        ),
        out_shape=(
            jax.ShapeDtypeStruct((n_pad, fout_p), jnp.bfloat16),
            jax.ShapeDtypeStruct((n_pad, 2), jnp.float32),
        ),
        compiler_params=_compiler_params(),
    )(x_bf, w_bf, a_pair)


# ----------------------------------------------------------------------------
# Kernel 2a: layer-1 attention + aggregation (attention map never materialized,
#            softmax normalization deferred to after the MXU matmul)
# ----------------------------------------------------------------------------
def _attn_l1_kernel(aself_ref, aneigh_ref, m_ref, h_ref, hout_ref, *, alpha):
    m = m_ref[...]                                              # (TQ, Np) bf16; <0 = non-edge
    dense = (aself_ref[...] + aneigh_ref[...]) * m              # promotes to f32
    dense = jnp.where(dense > 0, dense, alpha * dense)          # LeakyReLU
    masked = jnp.where(m >= 0, dense, -9e15)                    # mask == (adj > 0)
    masked = masked - jnp.max(masked, axis=1, keepdims=True)    # stable softmax
    e = jnp.exp(masked)
    inv = pl.reciprocal(jnp.sum(e, axis=1, keepdims=True), approx=True)
    # deferred normalization: (e @ h) * inv  ==  softmax(e) @ h
    hp = jnp.dot(e.astype(jnp.bfloat16), h_ref[...],
                 preferred_element_type=jnp.float32) * inv
    hp = jnp.where(hp > 0, hp, jnp.expm1(hp))                   # ELU(1)
    hout_ref[...] = hp.astype(hout_ref.dtype)                   # bf16 (feeds layer-2 x@W)


def gat_attn_layer1(a_self, a_neigh_row, m_fused, h_full, *, alpha, tq):
    n_pad = m_fused.shape[0]
    fout_p = h_full.shape[1]
    grid = (n_pad // tq,)
    kernel = functools.partial(_attn_l1_kernel, alpha=float(alpha))
    return pl.pallas_call(
        kernel,
        grid=grid,
        in_specs=[
            pl.BlockSpec((tq, 1), lambda i: (i, 0)),
            pl.BlockSpec((1, n_pad), lambda i: (0, 0)),
            pl.BlockSpec((tq, n_pad), lambda i: (i, 0)),
            pl.BlockSpec((n_pad, fout_p), lambda i: (0, 0)),
        ],
        out_specs=pl.BlockSpec((tq, fout_p), lambda i: (i, 0)),
        out_shape=jax.ShapeDtypeStruct((n_pad, fout_p), jnp.bfloat16),
        compiler_params=_compiler_params(),
    )(a_self, a_neigh_row, m_fused, h_full)


# ----------------------------------------------------------------------------
# Kernel 2b: layer-2 attention + aggregation + ELU + fused L2 normalization.
#            Emits the attention map A (f32, returned) and z in f32 + bf16.
# ----------------------------------------------------------------------------
def _attn_l2_kernel(aself_ref, aneigh_ref, m_ref, h_ref,
                    attn_ref, zn_ref, znb_ref, *, alpha):
    m = m_ref[...]
    dense = (aself_ref[...] + aneigh_ref[...]) * m
    dense = jnp.where(dense > 0, dense, alpha * dense)
    masked = jnp.where(m >= 0, dense, -9e15)
    masked = masked - jnp.max(masked, axis=1, keepdims=True)
    e = jnp.exp(masked)
    inv = pl.reciprocal(jnp.sum(e, axis=1, keepdims=True), approx=True)
    attention = e * inv
    attn_ref[...] = attention                                   # returned A (f32)
    hp = jnp.dot(attention.astype(jnp.bfloat16), h_ref[...],
                 preferred_element_type=jnp.float32)
    hp = jnp.where(hp > 0, hp, jnp.expm1(hp))                   # ELU(1)
    nrm = jnp.sqrt(jnp.sum(hp * hp, axis=1, keepdims=True))     # F.normalize(p=2, dim=1)
    zn = hp / jnp.maximum(nrm, 1e-12)
    zn_ref[...] = zn
    znb_ref[...] = zn.astype(jnp.bfloat16)


def gat_attn_layer2(a_self, a_neigh_row, m_fused, h_full, *, alpha, tq):
    n_pad = m_fused.shape[0]
    fout_p = h_full.shape[1]
    grid = (n_pad // tq,)
    kernel = functools.partial(_attn_l2_kernel, alpha=float(alpha))
    return pl.pallas_call(
        kernel,
        grid=grid,
        in_specs=[
            pl.BlockSpec((tq, 1), lambda i: (i, 0)),
            pl.BlockSpec((1, n_pad), lambda i: (0, 0)),
            pl.BlockSpec((tq, n_pad), lambda i: (i, 0)),
            pl.BlockSpec((n_pad, fout_p), lambda i: (0, 0)),
        ],
        out_specs=(
            pl.BlockSpec((tq, n_pad), lambda i: (i, 0)),
            pl.BlockSpec((tq, fout_p), lambda i: (i, 0)),
            pl.BlockSpec((tq, fout_p), lambda i: (i, 0)),
        ),
        out_shape=(
            jax.ShapeDtypeStruct((n_pad, n_pad), jnp.float32),    # A (returned -> f32)
            jax.ShapeDtypeStruct((n_pad, fout_p), jnp.float32),   # z (returned -> f32)
            jax.ShapeDtypeStruct((n_pad, fout_p), jnp.bfloat16),  # z for decoder columns
        ),
        compiler_params=_compiler_params(),
    )(a_self, a_neigh_row, m_fused, h_full)


# ----------------------------------------------------------------------------
# Kernel 3: dot-product decoder + Student's-t Q (z / centers pre-normalized)
# ----------------------------------------------------------------------------
def _decode_q_kernel(zrow_ref, znf_ref, cn_ref, c2_ref, apred_ref, q_ref, *, v):
    zb = zrow_ref[...]                                           # (TQ, E) f32, normalized

    # A_pred block = sigmoid(zn_block @ zn_full^T)
    logits = lax.dot_general(zb.astype(jnp.bfloat16), znf_ref[...],
                             (((1,), (1,)), ((), ())),
                             preferred_element_type=jnp.float32)  # (TQ, Np)
    apred_ref[...] = pl.reciprocal(1.0 + jnp.exp(-logits), approx=True)

    # Student's-t assignment: ||z||^2 + ||c||^2 - 2 z@c^T (centers hoisted)
    z2 = jnp.sum(zb * zb, axis=1, keepdims=True)                 # (TQ, 1)
    cross = lax.dot_general(zb, cn_ref[...], (((1,), (1,)), ((), ())),
                            preferred_element_type=jnp.float32)  # (TQ, K)
    dist2 = jnp.maximum(z2 + c2_ref[...] - 2.0 * cross, 0.0)
    q = 1.0 / (1.0 + dist2 / v)
    exponent = (v + 1.0) / 2.0
    if exponent != 1.0:                                          # skip pow when v == 1
        q = q ** exponent
    q_ref[...] = q / jnp.sum(q, axis=1, keepdims=True)


def decode_and_q(zn_f32, zn_bf16, cn_p, c2, *, v, tq):
    n_pad, e_p = zn_f32.shape
    k = cn_p.shape[0]
    grid = (n_pad // tq,)
    kernel = functools.partial(_decode_q_kernel, v=float(v))
    return pl.pallas_call(
        kernel,
        grid=grid,
        in_specs=[
            pl.BlockSpec((tq, e_p), lambda i: (i, 0)),
            pl.BlockSpec((n_pad, e_p), lambda i: (0, 0)),
            pl.BlockSpec((k, e_p), lambda i: (0, 0)),
            pl.BlockSpec((1, k), lambda i: (0, 0)),
        ],
        out_specs=(
            pl.BlockSpec((tq, n_pad), lambda i: (i, 0)),
            pl.BlockSpec((tq, k), lambda i: (i, 0)),
        ),
        out_shape=(
            jax.ShapeDtypeStruct((n_pad, n_pad), jnp.float32),    # A_pred (returned -> f32)
            jax.ShapeDtypeStruct((n_pad, k), jnp.float32),
        ),
        compiler_params=_compiler_params(),
    )(zn_f32, zn_bf16, cn_p, c2)


# ----------------------------------------------------------------------------
# DAEGC_MV forward
# ----------------------------------------------------------------------------
def daegc_mv_forward(params, x, adj, M, *, alpha, v):
    n, f_in = x.shape
    hsz = params["W1"].shape[1]
    esz = params["W2"].shape[1]
    k = params["cluster_layer"].shape[0]

    n_pad = _round_up(n, 128)
    fin_p = _round_up(f_in, 128)
    h_p = _round_up(hsz, 128)
    e_p = _round_up(esz, 128)
    tq = _pick_tq(n_pad, max(h_p, e_p))

    # Fused adjacency/transition operand (bf16): M on edges, -1 on non-edges
    # (and on padded rows/cols). In-kernel mask is (m_fused >= 0), i.e. driven
    # by adj alone, so edges with M == 0 behave exactly like the reference.
    adj_p = _pad2(adj, n_pad, n_pad)
    m_fused = jnp.where(adj_p > 0, _pad2(M, n_pad, n_pad), -1.0).astype(jnp.bfloat16)

    x_bf = _pad2(x, n_pad, fin_p).astype(jnp.bfloat16)
    w1_bf = _pad2(params["W1"], fin_p, h_p).astype(jnp.bfloat16)
    apair1 = _pad2(jnp.concatenate([params["a_self1"], params["a_neigh1"]], axis=1),
                   h_p, 2)
    w2_bf = _pad2(params["W2"], h_p, e_p).astype(jnp.bfloat16)
    apair2 = _pad2(jnp.concatenate([params["a_self2"], params["a_neigh2"]], axis=1),
                   e_p, 2)

    # Normalized cluster centers hoisted out of the decode kernel (tiny).
    c = params["cluster_layer"]
    cn = c / jnp.maximum(jnp.sqrt(jnp.sum(c * c, axis=1, keepdims=True)), 1e-12)
    c2 = jnp.sum(cn * cn, axis=1)[None, :]                        # (1, K)
    cn_p = _pad2(cn, k, e_p)

    # ---- GAT layer 1 (ELU; attention map never materialized) ----
    h1, pair1 = gat_project(x_bf, w1_bf, apair1, tq=tq)
    h1p = gat_attn_layer1(pair1[:, 0:1], pair1[:, 1:2].reshape(1, n_pad),
                          m_fused, h1, alpha=alpha, tq=tq)

    # ---- GAT layer 2 (ELU + fused L2 normalize; attention map A returned) ----
    h2, pair2 = gat_project(h1p, w2_bf, apair2, tq=tq)
    a_pad, zn_f32, zn_bf16 = gat_attn_layer2(
        pair2[:, 0:1], pair2[:, 1:2].reshape(1, n_pad),
        m_fused, h2, alpha=alpha, tq=tq)

    # ---- decoder + soft assignments ----
    apred_pad, q_pad = decode_and_q(zn_f32, zn_bf16, cn_p, c2, v=v, tq=tq)

    A_pred = apred_pad[:n, :n]
    z = zn_f32[:n, :esz]
    q = q_pad[:n, :]
    A = a_pad[:n, :n]
    return A_pred, z, q, A


# ----------------------------------------------------------------------------
# Deterministic parameter initialization (no checkpoint loading)
# ----------------------------------------------------------------------------
def xavier_uniform(key, shape, gain=1.414):
    fan_in, fan_out = shape[0], shape[1]
    bound = gain * (6.0 / (fan_in + fan_out)) ** 0.5
    return jax.random.uniform(key, shape, minval=-bound, maxval=bound,
                              dtype=jnp.float32)


def xavier_normal(key, shape, gain=1.0):
    fan_in, fan_out = shape[0], shape[1]
    std = gain * (2.0 / (fan_in + fan_out)) ** 0.5
    return std * jax.random.normal(key, shape, dtype=jnp.float32)


def init_params(key, num_features, hidden_size, embedding_size, num_clusters):
    ks = jax.random.split(key, 7)
    return {
        "W1": xavier_uniform(ks[0], (num_features, hidden_size)),
        "a_self1": xavier_uniform(ks[1], (hidden_size, 1)),
        "a_neigh1": xavier_uniform(ks[2], (hidden_size, 1)),
        "W2": xavier_uniform(ks[3], (hidden_size, embedding_size)),
        "a_self2": xavier_uniform(ks[4], (embedding_size, 1)),
        "a_neigh2": xavier_uniform(ks[5], (embedding_size, 1)),
        "cluster_layer": xavier_normal(ks[6], (num_clusters, embedding_size)),
    }


if __name__ == "__main__":
    N = 8                 # number of graph nodes
    num_features = 16
    hidden_size = 32
    embedding_size = 16
    num_clusters = 4
    alpha = 0.2
    v = 1.0

    key = jax.random.PRNGKey(0)
    k_param, k_x, k_adj = jax.random.split(key, 3)

    params = init_params(k_param, num_features, hidden_size, embedding_size,
                         num_clusters)

    x = jax.random.normal(k_x, (N, num_features), dtype=jnp.float32)

    # Symmetric binary adjacency with self-loops.
    a_rand = (jax.random.uniform(k_adj, (N, N)) < 0.4).astype(jnp.float32)
    adj = jnp.maximum(a_rand, a_rand.T)
    adj = jnp.maximum(adj, jnp.eye(N, dtype=jnp.float32))

    # t=2 transition matrix M (as DAEGC's get_M): mean of B and B @ B.
    deg = jnp.sum(adj, axis=1, keepdims=True)
    B = adj / deg
    M = (B + B @ B) / 2.0

    A_pred, z, q, A = daegc_mv_forward(params, x, adj, M, alpha=alpha, v=v)
    jax.block_until_ready((A_pred, z, q, A))

    assert A_pred.shape == (N, N)
    assert z.shape == (N, embedding_size)
    assert q.shape == (N, num_clusters)
    assert A.shape == (N, N)
    assert bool(jnp.all(jnp.isfinite(A_pred)))
    assert bool(jnp.all(jnp.isfinite(z)))
    assert bool(jnp.all(jnp.isfinite(q)))
    assert bool(jnp.all(jnp.isfinite(A)))
    # q rows must be a probability distribution
    assert bool(jnp.all(jnp.abs(jnp.sum(q, axis=1) - 1.0) < 1e-3))
    print("KERNEL_OK")
</pallas_src>

<mosaic_0001>
module attributes {stable_mosaic.version = 11 : i64} {
  func.func @_proj_kernel(%arg0: i32, %arg1: memref<128x128xbf16, #tpu.memory_space<vmem>>, %arg2: memref<128x128xbf16, #tpu.memory_space<vmem>>, %arg3: memref<128x2xf32, #tpu.memory_space<vmem>>, %arg4: memref<128x128xbf16, #tpu.memory_space<vmem>>, %arg5: memref<128x2xf32, #tpu.memory_space<vmem>>) attributes {dimension_semantics = [#tpu.dimension_semantics<parallel>], iteration_bounds = array<i64: 1>, scalar_prefetch = 0 : i64, scratch_operands = 0 : i64, tpu.core_type = #tpu.core_type<tc>, window_params = [{transform_indices = @transform_0, window_bounds = array<i64: 128, 128>}, {pipeline_mode = #tpu.pipeline_mode<synchronous>, transform_indices = @transform_1, window_bounds = array<i64: 128, 128>}, {pipeline_mode = #tpu.pipeline_mode<synchronous>, transform_indices = @transform_2, window_bounds = array<i64: 128, 2>}, {transform_indices = @transform_3, window_bounds = array<i64: 128, 128>}, {transform_indices = @transform_4, window_bounds = array<i64: 128, 2>}]} {
    %c0 = arith.constant 0 : index
    %c0_0 = arith.constant 0 : index
    %0 = vector.load %arg1[%c0, %c0_0] : memref<128x128xbf16, #tpu.memory_space<vmem>>, vector<128x128xbf16>
    %c0_1 = arith.constant 0 : index
    %c0_2 = arith.constant 0 : index
    %1 = vector.load %arg2[%c0_1, %c0_2] : memref<128x128xbf16, #tpu.memory_space<vmem>>, vector<128x128xbf16>
    %cst = arith.constant dense<0.000000e+00> : vector<128x128xf32>
    %2 = tpu.matmul %0, %1, %cst {dimension_numbers = #tpu.dot_dimension_numbers<[1], [0], [0], [1], [0, 0, 1, 1], [], []>} : vector<128x128xbf16>, vector<128x128xbf16>, vector<128x128xf32> -> vector<128x128xf32>
    %c0_3 = arith.constant 0 : index
    %c0_4 = arith.constant 0 : index
    %3 = vector.load %arg3[%c0_3, %c0_4] : memref<128x2xf32, #tpu.memory_space<vmem>>, vector<128x2xf32>
    %cst_5 = arith.constant dense<0.000000e+00> : vector<128x2xf32>
    %4 = tpu.matmul %2, %3, %cst_5 {dimension_numbers = #tpu.dot_dimension_numbers<[1], [0], [0], [1], [0, 0, 1, 1], [], []>} : vector<128x128xf32>, vector<128x2xf32>, vector<128x2xf32> -> vector<128x2xf32>
    %c0_6 = arith.constant 0 : index
    %c0_7 = arith.constant 0 : index
    %5 = vector.load %arg5[%c0_6, %c0_7] : memref<128x2xf32, #tpu.memory_space<vmem>>, vector<128x2xf32>
    tpu.vector_store %arg5[%c0_6, %c0_7], %4 {strides = array<i32>} : memref<128x2xf32, #tpu.memory_space<vmem>>, vector<128x2xf32>,
    %6 = arith.truncf %2 : vector<128x128xf32> to vector<128x128xbf16>
    %c0_8 = arith.constant 0 : index
    %c0_9 = arith.constant 0 : index
    %7 = vector.load %arg4[%c0_8, %c0_9] : memref<128x128xbf16, #tpu.memory_space<vmem>>, vector<128x128xbf16>
    tpu.vector_store %arg4[%c0_8, %c0_9], %6 {strides = array<i32>} : memref<128x128xbf16, #tpu.memory_space<vmem>>, vector<128x128xbf16>,
    return
  }
  func.func @transform_0(%arg0: i32) -> (i32, i32) {
    %c0_i32 = arith.constant 0 : i32
    %c0_i32_0 = arith.constant 0 : i32
    return %arg0, %c0_i32 : i32, i32
  }
  func.func @transform_1(%arg0: i32) -> (i32, i32) {
    %c0_i32 = arith.constant 0 : i32
    %c0_i32_0 = arith.constant 0 : i32
    %c0_i32_1 = arith.constant 0 : i32
    return %c0_i32, %c0_i32_0 : i32, i32
  }
  func.func @transform_2(%arg0: i32) -> (i32, i32) {
    %c0_i32 = arith.constant 0 : i32
    %c0_i32_0 = arith.constant 0 : i32
    %c0_i32_1 = arith.constant 0 : i32
    return %c0_i32, %c0_i32_0 : i32, i32
  }
  func.func @transform_3(%arg0: i32) -> (i32, i32) {
    %c0_i32 = arith.constant 0 : i32
    %c0_i32_0 = arith.constant 0 : i32
    return %arg0, %c0_i32 : i32, i32
  }
  func.func @transform_4(%arg0: i32) -> (i32, i32) {
    %c0_i32 = arith.constant 0 : i32
    %c0_i32_0 = arith.constant 0 : i32
    return %arg0, %c0_i32 : i32, i32
  }
}

</mosaic_0001>

<bundles_post_ra>
// kernel: tpu_custom_call.1
= control target key start
LH: loop header
LB: loop body
LE: loop exit
PB: predicated region body
PF: predicated region fallthrough
CT: control target
= control target key end

     0   :  { %s984_s0 = inlined_call_operand.vmem [shape: bf16[128,128], index: 0, kind: input, shape index: {}]   ;;  %s985_s1 = inlined_call_operand.vmem [shape: bf16[128,128], index: 1, kind: input, shape index: {}]   ;;  %s986_s2 = inlined_call_operand.vmem [shape: f32[128,2], index: 2, kind: input, shape index: {}]   ;;  %s987_s3 = inlined_call_operand.hbm [shape: bf16[128,128], index: 3, kind: output, shape index: {0}]   ;;  %s988_s4 = inlined_call_operand.vmem [shape: f32[128,2], index: 4, kind: output, shape index: {1}]  }
   0x1   :  { %v755_v0 = vld [vmem:[%s985_s1 + $0x38] sm:$0xff]   ;;  %v756_v1 = vld [vmem:[%s985_s1 + $0x30] sm:$0xff]   ;;  %v757_v2 = vld [vmem:[%s985_s1 + $0x28] sm:$0xff]  }
   0x2   :  { %664 = vmatprep.subr.bf16.mxu0 %v755_v0  ;;  %v758_v3 = vld [vmem:[%s985_s1 + $0x20] sm:$0xff]   ;;  %v759_v5 = vld [vmem:[%s985_s1 + $0x18] sm:$0xff]   ;;  %v760_v6 = vld [vmem:[%s985_s1 + $0x10] sm:$0xff]  }
   0x3   :  { %665 = vmatpush3.bf16.msra.mxu0 %v755_v0  ;;  %v763_v4 = vld [vmem:[%s984_s0] sm:$0xff]   ;;  %v258_v7 = vld [vmem:[%s986_s2 + $0x78] sm:$0xff]  ;;  %v257_v8 = vld [vmem:[%s986_s2 + $0x70] sm:$0xff] }
   0x4   :  { %666 = vmatprep.subr.bf16.mxu0 %v756_v1  ;;  %680 = vmatprep.mubr.bf16.mxu0 %v763_v4  ;;  %v256_v9 = vld [vmem:[%s986_s2 + $0x68] sm:$0xff]  ;;  %v255_v11 = vld [vmem:[%s986_s2 + $0x60] sm:$0xff] }
   0x5   :  { %696 = vmatprep.subr.mxu1 %v258_v7  ;;  %v761_v10 = vld [vmem:[%s985_s1 + $0x8] sm:$0xff]  }
   0x6   :  { %697 = vmatpush3.msra.mxu1 %v258_v7 }
   0x7   :  { %667 = vmatpush3.bf16.msra.mxu0 %v756_v1  ;;  %698 = vmatprep.subr.mxu1 %v257_v8 }
   0x8   :  { %668 = vmatprep.subr.bf16.mxu0 %v757_v2  ;;  %699 = vmatpush3.msra.mxu1 %v257_v8 }
   0xb   :  { %669 = vmatpush3.bf16.msra.mxu0 %v757_v2 }
   0xc   :  { %670 = vmatprep.subr.bf16.mxu0 %v758_v3 }
   0xf   :  { %671 = vmatpush3.bf16.msra.mxu0 %v758_v3 }
  0x10   :  { %672 = vmatprep.subr.bf16.mxu0 %v759_v5 }
  0x13   :  { %673 = vmatpush3.bf16.msra.mxu0 %v759_v5 }
  0x14   :  { %674 = vmatprep.subr.bf16.mxu0 %v760_v6 }
  0x15   :  { %10 = vsyncpa [#allocation3], 0  ;;  %700 = vmatprep.subr.mxu1 %v256_v9  ;;  %v254_v12 = vld [vmem:[%s986_s2 + $0x58] sm:$0xff]  ;;  %v762_v13 = vld [vmem:[%s985_s1] sm:$0xff]  }
  0x16   :  { %701 = vmatpush3.msra.mxu1 %v256_v9  ;;  %v253_v14 = vld [vmem:[%s986_s2 + $0x50] sm:$0xff]  ;;  %v252_v15 = vld [vmem:[%s986_s2 + $0x48] sm:$0xff]  ;;  %v251_v16 = vld [vmem:[%s986_s2 + $0x40] sm:$0xff] }
  0x17   :  { %675 = vmatpush3.bf16.msra.mxu0 %v760_v6  ;;  %702 = vmatprep.subr.mxu1 %v255_v11  ;;  %v764_v17 = vld [vmem:[%s984_s0 + $0x8] sm:$0xff]   ;;  %v250_v18 = vld [vmem:[%s986_s2 + $0x38] sm:$0xff]  ;;  %v765_v19 = vld [vmem:[%s984_s0 + $0x10] sm:$0xff]  }
  0x18   :  { %676 = vmatprep.subr.bf16.mxu0 %v761_v10  ;;  %703 = vmatpush3.msra.mxu1 %v255_v11  ;;  %v249_v20 = vld [vmem:[%s986_s2 + $0x30] sm:$0xff]  ;;  %v248_v21 = vld [vmem:[%s986_s2 + $0x28] sm:$0xff]  ;;  %v247_v22 = vld [vmem:[%s986_s2 + $0x20] sm:$0xff] }
  0x19   :  { %704 = vmatprep.subr.mxu1 %v254_v12  ;;  %v766_v23 = vld [vmem:[%s984_s0 + $0x18] sm:$0xff]   ;;  %v767_v25 = vld [vmem:[%s984_s0 + $0x20] sm:$0xff]   ;;  %v768_v26 = vld [vmem:[%s984_s0 + $0x28] sm:$0xff]  }
  0x1a   :  { %705 = vmatpush3.msra.mxu1 %v254_v12  ;;  %v246_v24 = vld [vmem:[%s986_s2 + $0x18] sm:$0xff]  ;;  %v769_v27 = vld [vmem:[%s984_s0 + $0x30] sm:$0xff]   ;;  %v244_v30 = vld [vmem:[%s986_s2 + $0x8] sm:$0xff] }
  0x1b   :  { %677 = vmatpush3.bf16.msra.mxu0 %v761_v10  ;;  %706 = vmatprep.subr.mxu1 %v253_v14  ;;  %v770_v28 = vld [vmem:[%s984_s0 + $0x38] sm:$0xff]   ;;  %v245_v29 = vld [vmem:[%s986_s2 + $0x10] sm:$0xff]  ;;  %v243_v31 = vld [vmem:[%s986_s2] sm:$0xff]  ;;  %s793_s0 = smov [#allocation2]  }
  0x1c   :  { %678 = vmatprep.subr.bf16.mxu0 %v762_v13  ;;  %707 = vmatpush3.msra.mxu1 %v253_v14  ;;  %s506_s2 = sshll.u32 %s793_s0, 4  ;;  %s507_s2 = int_to_ptr.vmem [resolvable:$true] %s506_s2 }
  0x1d   :  { %708 = vmatprep.subr.mxu1 %v252_v15  ;;  %s771_s25 = scalar_lea.vmem %s507_s2, 1024  ;;  %p776_p1 = scmp.lt.s32.totalorder %s507_s2, %s507_s2 }
  0x1e   :  { %709 = vmatpush3.msra.mxu1 %v252_v15  ;;  %p772_p0 = scmp.ne.s32.totalorder %s507_s2, %s771_s25  ;;  %p777_p2 = scmp.lt.s32.totalorder %s771_s25, %s771_s25 }
  0x1f   :  { %679 = vmatpush3.bf16.msra.mxu0 %v762_v13  ;;  %710 = vmatprep.subr.mxu1 %v251_v16 }
  0x20   :  { %711 = vmatpush3.msra.mxu1 %v251_v16  ;;  %p778_p3 = por %p777_p2, %p776_p1 }
  0x21   :  { %712 = vmatprep.subr.mxu1 %v250_v18 }
  0x22   :  { %681 = vmatmul.mubr.bf16.vlgmr.msra.gmra.mxu0 %v764_v17  ;;  %713 = vmatpush3.msra.mxu1 %v250_v18  ;;  %p779_p4 = pnand %p778_p3, %p772_p0 }
  0x23   :  { %684 = vmatprep.mubr.bf16.mxu0 %v765_v19  ;;  %714 = vmatprep.subr.mxu1 %v249_v20 }
  0x24   :  { %715 = vmatpush3.msra.mxu1 %v249_v20 }
  0x25   :  { %716 = vmatprep.subr.mxu1 %v248_v21 }
  0x26   :  { %717 = vmatpush3.msra.mxu1 %v248_v21 }
  0x27   :  { %718 = vmatprep.subr.mxu1 %v247_v22 }
  0x28   :  { %719 = vmatpush3.msra.mxu1 %v247_v22 }
  0x29   :  { %720 = vmatprep.subr.mxu1 %v246_v24 }
  0x2a   :  { %685 = vmatmul.mubr.bf16.gmra.mxu0 %v766_v23  ;;  %721 = vmatpush3.msra.mxu1 %v246_v24 }
  0x2b   :  { %688 = vmatprep.mubr.bf16.mxu0 %v767_v25  ;;  %722 = vmatprep.subr.mxu1 %v245_v29 }
  0x2c   :  { %723 = vmatpush3.msra.mxu1 %v245_v29 }
  0x2d   :  { %724 = vmatprep.subr.mxu1 %v244_v30 }
  0x2e   :  { %725 = vmatpush3.msra.mxu1 %v244_v30 }
  0x2f   :  { %726 = vmatprep.subr.mxu1 %v243_v31 }
  0x30   :  { %727 = vmatpush3.msra.mxu1 %v243_v31 }
  0x32   :  { %689 = vmatmul.mubr.bf16.gmra.mxu0 %v768_v26 }
  0x33   :  { %692 = vmatprep.mubr.bf16.mxu0 %v769_v27 }
  0x3a   :  { %693 = vmatmul.mubr.bf16.gmra.mxu0 %v770_v28 }
  0xe2   :  { %v682_v32 = vpop.f32.mrf.mxu0 }
  0xe4   :  { %v180_v33 = vpop.f32.mrf.mxu0 }
  0xe5   :  { %728 = vmatprep.mubr.f32.mxu1 %v180_v33 }
  0xe6   :  { %v683_v34 = vpop.f32.mrf.mxu0 }
  0xe7   :  { %v577_v35 = vpack.c.bf16 %v683_v34, %v682_v32 }
  0xe8   :  { %v183_v36 = vpop.f32.mrf.mxu0 }
  0xe9   :  { %609 = vst [vmem:[#allocation2 + $0x8] sm:$0xff] %v577_v35   ;;  %v572_v37 = vpack.c.bf16 %v183_v36, %v180_v33  ;;  %729 = vmatmul.mubr.f32.vlgmr.msra.gmra.mxu1 %v183_v36 }
  0xea   :  { %v686_v38 = vpop.f32.mrf.mxu0  ;;  %731 = vmatprep.mubr.f32.mxu1 %v682_v32 }
  0xeb   :  { %573 = vst [vmem:[#allocation2] sm:$0xff] %v572_v37  }
  0xec   :  { %v196_v39 = vpop.f32.mrf.mxu0 }
  0xed   :  { %732 = vmatmul.mubr.f32.gmra.mxu1 %v683_v34 }
  0xee   :  { %v687_v40 = vpop.f32.mrf.mxu0  ;;  %734 = vmatprep.mubr.f32.mxu1 %v196_v39 }
  0xef   :  { %v587_v41 = vpack.c.bf16 %v687_v40, %v686_v38 }
  0xf0   :  { %v199_v42 = vpop.f32.mrf.mxu0 }
  0xf1   :  { %611 = vst [vmem:[#allocation2 + $0x18] sm:$0xff] %v587_v41   ;;  %v582_v43 = vpack.c.bf16 %v199_v42, %v196_v39  ;;  %735 = vmatmul.mubr.f32.gmra.mxu1 %v199_v42 }
  0xf2   :  { %v690_v44 = vpop.f32.mrf.mxu0  ;;  %737 = vmatprep.mubr.f32.mxu1 %v686_v38 }
  0xf3   :  { %610 = vst [vmem:[#allocation2 + $0x10] sm:$0xff] %v582_v43  }
  0xf4   :  { %v212_v45 = vpop.f32.mrf.mxu0 }
  0xf5   :  { %738 = vmatmul.mubr.f32.gmra.mxu1 %v687_v40 }
  0xf6   :  { %v691_v46 = vpop.f32.mrf.mxu0  ;;  %740 = vmatprep.mubr.f32.mxu1 %v212_v45 }
  0xf7   :  { %v597_v47 = vpack.c.bf16 %v691_v46, %v690_v44 }
  0xf8   :  { %v215_v48 = vpop.f32.mrf.mxu0 }
  0xf9   :  { %613 = vst [vmem:[#allocation2 + $0x28] sm:$0xff] %v597_v47   ;;  %v592_v49 = vpack.c.bf16 %v215_v48, %v212_v45  ;;  %741 = vmatmul.mubr.f32.gmra.mxu1 %v215_v48 }
  0xfa   :  { %v694_v50 = vpop.f32.mrf.mxu0  ;;  %743 = vmatprep.mubr.f32.mxu1 %v690_v44 }
  0xfb   :  { %612 = vst [vmem:[#allocation2 + $0x20] sm:$0xff] %v592_v49  }
  0xfc   :  { %v228_v51 = vpop.f32.mrf.mxu0 }
  0xfd   :  { %744 = vmatmul.mubr.f32.gmra.mxu1 %v691_v46 }
  0xfe   :  { %v695_v52 = vpop.f32.mrf.mxu0  ;;  %746 = vmatprep.mubr.f32.mxu1 %v228_v51 }
  0xff   :  { %v607_v53 = vpack.c.bf16 %v695_v52, %v694_v50 }
 0x100   :  { %v231_v54 = vpop.f32.mrf.mxu0 }
 0x101   :  { %615 = vst [vmem:[#allocation2 + $0x38] sm:$0xff] %v607_v53   ;;  %v602_v55 = vpack.c.bf16 %v231_v54, %v228_v51  ;;  %747 = vmatmul.mubr.f32.gmra.mxu1 %v231_v54 }
 0x102   :  { %749 = vmatprep.mubr.f32.mxu1 %v694_v50 }
 0x103   :  { %614 = vst [vmem:[#allocation2 + $0x30] sm:$0xff] %v602_v55  }
 0x105   :  { %750 = vmatmul.mubr.f32.gmra.mxu1 %v695_v52 }
 0x106   :  { %782 = shalt.err (!%p779_p4)
}
 0x107   :  { %s794_s26 = smov 64   ;;  %s795_s27 = smov 4   ;;  %vm404_vm0 = vcmask 15360  }
 0x108   :  { %512 = dma.vmem_to_hbm [thread:$0]  %s507_s2, 1024, %s987_s3, [#allocation3], %s794_s26, %s794_s26, %s795_s27  }
 0x1a9   :  { %v730_v56 = vpop.f32.mrf.mxu1 }
 0x1aa   :  { %406 = vst.msk [vmem:[%s988_s4 + $0x8] sm:$0xff] %vm404_vm0, %v730_v56 }
 0x1ab   :  { %v325_v57 = vpop.f32.mrf.mxu1 }
 0x1ac   :  { %405 = vst.msk [vmem:[%s988_s4] sm:$0xff] %vm404_vm0, %v325_v57 }
 0x1ad   :  { %v733_v58 = vpop.f32.mrf.mxu1 }
 0x1ae   :  { %408 = vst.msk [vmem:[%s988_s4 + $0x18] sm:$0xff] %vm404_vm0, %v733_v58 }
 0x1af   :  { %v335_v59 = vpop.f32.mrf.mxu1 }
 0x1b0   :  { %407 = vst.msk [vmem:[%s988_s4 + $0x10] sm:$0xff] %vm404_vm0, %v335_v59 }
 0x1b1   :  { %v736_v60 = vpop.f32.mrf.mxu1 }
 0x1b2   :  { %410 = vst.msk [vmem:[%s988_s4 + $0x28] sm:$0xff] %vm404_vm0, %v736_v60 }
 0x1b3   :  { %v345_v61 = vpop.f32.mrf.mxu1 }
 0x1b4   :  { %409 = vst.msk [vmem:[%s988_s4 + $0x20] sm:$0xff] %vm404_vm0, %v345_v61 }
 0x1b5   :  { %v739_v62 = vpop.f32.mrf.mxu1 }
 0x1b6   :  { %412 = vst.msk [vmem:[%s988_s4 + $0x38] sm:$0xff] %vm404_vm0, %v739_v62 }
 0x1b7   :  { %v355_v63 = vpop.f32.mrf.mxu1 }
 0x1b8   :  { %411 = vst.msk [vmem:[%s988_s4 + $0x30] sm:$0xff] %vm404_vm0, %v355_v63 }
 0x1b9   :  { %v742_v0 = vpop.f32.mrf.mxu1 }
 0x1ba   :  { %414 = vst.msk [vmem:[%s988_s4 + $0x48] sm:$0xff] %vm404_vm0, %v742_v0 }
 0x1bb   :  { %v365_v1 = vpop.f32.mrf.mxu1 }
 0x1bc   :  { %413 = vst.msk [vmem:[%s988_s4 + $0x40] sm:$0xff] %vm404_vm0, %v365_v1 }
 0x1bd   :  { %v745_v2 = vpop.f32.mrf.mxu1 }
 0x1be   :  { %416 = vst.msk [vmem:[%s988_s4 + $0x58] sm:$0xff] %vm404_vm0, %v745_v2 }
 0x1bf   :  { %v375_v3 = vpop.f32.mrf.mxu1 }
 0x1c0   :  { %415 = vst.msk [vmem:[%s988_s4 + $0x50] sm:$0xff] %vm404_vm0, %v375_v3 }
 0x1c1   :  { %v748_v4 = vpop.f32.mrf.mxu1 }
 0x1c2   :  { %418 = vst.msk [vmem:[%s988_s4 + $0x68] sm:$0xff] %vm404_vm0, %v748_v4 }
 0x1c3   :  { %v385_v5 = vpop.f32.mrf.mxu1 }
 0x1c4   :  { %417 = vst.msk [vmem:[%s988_s4 + $0x60] sm:$0xff] %vm404_vm0, %v385_v5 }
 0x1c5   :  { %v751_v6 = vpop.f32.mrf.mxu1 }
 0x1c6   :  { %420 = vst.msk [vmem:[%s988_s4 + $0x78] sm:$0xff] %vm404_vm0, %v751_v6 }
 0x1c7   :  { %v395_v7 = vpop.f32.mrf.mxu1 }
 0x1c8   :  { %419 = vst.msk [vmem:[%s988_s4 + $0x70] sm:$0xff] %vm404_vm0, %v395_v7 }
 0x1c9   :  { %791 = dma.done.wait [#allocation3], 1024  }
 0x1ca   :  { %792 = vsyncadd [#allocation3], 4294966272 }
 0x1cb   :  { %520 = vsyncpa [#allocation3], 1 }

</bundles_post_ra>
